<compile_context>
chip_gen: v7x
topology: tpu7x:2x2x1
jax: 0.10.0
libtpu: 0.0.40
codegen_flags: <defaults>
</compile_context>

<pallas_src>
import jax
import jax.numpy as jnp
import numpy as np
from jax.experimental import pallas as pl
from jax.experimental.pallas import tpu as pltpu

N_FOURIER = 3          # module default n_fourier=3
BN_EPS = 1e-3          # scvi FCLayers uses BatchNorm1d(eps=0.001); used consistently below
_NEG_BIG = -1e9        # bias for padded gene columns -> exp underflows to exactly 0


def _round_up(v, m):
    return (v + m - 1) // m * m


# ----------------------------------------------------------------------------- kernel
def _make_kernel(want_rate, want_nc, out_dtype):
    def kernel(zlat_ref, side_ref, w1_ref, b1_ref, w2_ref, b2_ref, fw_ref, *out_refs):
        # non-cycle branch: (BN-folded) Linear -> ReLU -> Linear, bf16 MXU, f32 accum.
        h = jnp.dot(zlat_ref[...], w1_ref[...], preferred_element_type=jnp.float32)
        h = jnp.maximum(h + b1_ref[...], 0.0)
        nco = jnp.dot(h.astype(jnp.bfloat16), w2_ref[...],
                      preferred_element_type=jnp.float32) + b2_ref[...]

        # cell-cycle branch: side = [cos(k*a) (3), sin(k*a) (3), exp(lib), 0] in bf16;
        # fw_ref carries the matching 6 mask-folded rows + 2 zero rows, so one small
        # bf16 matmul yields the masked cycle effect (exp(lib) hits a zero row).
        cyc = jnp.dot(side_ref[...], fw_ref[...], preferred_element_type=jnp.float32)

        # softmax over (padded) genes in f32; padded columns carry bias -1e9 -> 0.
        eta = nco + cyc
        m = jnp.max(eta, axis=-1, keepdims=True)
        e = jnp.exp(eta - m)
        denom = jnp.sum(e, axis=-1, keepdims=True)
        px_scale = e * pl.reciprocal(denom, approx=True)

        out_refs[0][...] = px_scale.astype(out_dtype)
        idx = 1
        if want_rate:
            explib = side_ref[:, 6:7].astype(jnp.float32)   # exp(library), hoisted per row
            out_refs[idx][...] = (explib * px_scale).astype(out_dtype)
            idx += 1
        if want_nc:
            out_refs[idx][...] = nco.astype(out_dtype)

    return kernel


# ----------------------------------------------------------------------------- params
def init_params(key, n_input, n_output, n_hidden, n_fourier=N_FOURIER):
    n_latent = n_input - 2
    ks = jax.random.split(key, 8)
    return {
        # FCLayers layer 0: Linear(n_latent -> n_hidden) + BatchNorm1d + ReLU
        "w1": 0.1 * jax.random.normal(ks[0], (n_latent, n_hidden), jnp.float32),
        "b1": 0.1 * jax.random.normal(ks[1], (n_hidden,), jnp.float32),
        "bn_gamma": jnp.ones((n_hidden,), jnp.float32),
        "bn_beta": jnp.zeros((n_hidden,), jnp.float32),
        "bn_run_mean": jnp.zeros((n_hidden,), jnp.float32),
        "bn_run_var": jnp.ones((n_hidden,), jnp.float32),
        # non_cycle_linear: Linear(n_hidden -> n_output)
        "w2": 0.1 * jax.random.normal(ks[2], (n_hidden, n_output), jnp.float32),
        "b2": 0.1 * jax.random.normal(ks[3], (n_output,), jnp.float32),
        # fourier_W: 0.01 * randn(2*n_fourier, n_output)
        "fourier_W": 0.01 * jax.random.normal(ks[4], (2 * n_fourier, n_output), jnp.float32),
        # disp_raw: 0.01 * randn(n_output)
        "disp_raw": 0.01 * jax.random.normal(ks[5], (n_output,), jnp.float32),
        # cycle_gene_mask default: all ones
        "cycle_mask": jnp.ones((n_output,), jnp.float32),
    }


# ----------------------------------------------------------------------------- tiling
def _vmem_capacity_bytes():
    try:
        info = pltpu.get_tpu_info()
        cap = int(getattr(info, "vmem_capacity_bytes", 0))
        if cap > 0:
            return cap
    except Exception:
        pass
    return 64 << 20   # conservative fallback (v7x-sized VMEM)


def _tile_and_vmem(B, n_latent, nh_pad, n_pad, n_outputs, out_itemsize):
    """Pick a batch tile against a per-generation VMEM budget (~5/8 of physical:
    ~80 MiB on v5e/v6e, ~40 MiB on v7x), counting streamed blocks (double-buffered),
    single-buffered resident weights, and the in-kernel f32 softmax temporaries."""
    cap = _vmem_capacity_bytes()
    budget = (cap * 5) // 8

    weight_bytes = (n_latent * nh_pad * 2      # w1 (bf16, BN-folded)
                    + nh_pad * 4               # b1 (f32)
                    + nh_pad * n_pad * 2       # w2 (bf16, gene-padded)
                    + n_pad * 4                # b2 (f32, -1e9 padded cols)
                    + 8 * n_pad * 2)           # fourier side-matrix (bf16)

    def est(tb, weight_buffers):
        stream = tb * n_latent * 2 + tb * 8 * 2 + n_outputs * tb * n_pad * out_itemsize
        temps = tb * nh_pad * 6                # h in f32 + bf16 copy for 2nd matmul
        temps += 4 * tb * n_pad * 4            # nco/cyc/eta/e f32 softmax temporaries
        return 2 * stream + weight_buffers * weight_bytes + temps

    b16 = max(_round_up(B, 16), 16)
    # Ensure >= 2 grid steps when the batch permits, so v7x can shard the
    # ("parallel",) batch axis across both TensorCores.
    if b16 >= 32:
        cap_tile = _round_up(b16, 32) // 2
    else:
        cap_tile = b16

    tile_b = None
    for cand in (1024, 512, 256, 128, 64, 32, 16):
        if cand <= cap_tile and est(cand, 1) <= budget:
            tile_b = cand
            break
    if tile_b is None:
        if est(16, 1) > budget:
            # TODO(synk): tile the gene axis with a two-pass/online softmax instead.
            raise ValueError(
                "DecoderCCVI Pallas kernel: even tile_b=16 exceeds the VMEM budget "
                f"({est(16, 1)} > {budget} bytes); gene-axis tiling is required.")
        tile_b = 16

    # Request a scoped-VMEM limit with headroom (v5e's default scoped limit is 16 MiB).
    vmem_limit = int(min((cap * 3) // 4, max(2 * est(tile_b, 2), 32 << 20)))
    return tile_b, vmem_limit


# ----------------------------------------------------------------------------- wrapper
def decoder_ccvi_forward(z, library, t, params, remove_cell_cycle=False,
                         want_px_rate=True, want_non_cycle_out=True,
                         out_dtype=jnp.bfloat16):
    """JAX/Pallas equivalent of DecoderCCVI.forward (inference-mode BN, no dropout).
    Set want_px_rate / want_non_cycle_out to False to skip those HBM writes entirely."""
    del t  # unused by the PyTorch forward as well
    z = z.astype(jnp.float32)
    B, n_input = z.shape
    n_latent = n_input - 2
    n_hidden = params["w1"].shape[1]
    n_output = params["w2"].shape[1]
    n_pad = _round_up(n_output, 128)
    nh_pad = _round_up(n_hidden, 16)

    # ---- glue: cycle coords -> Fourier basis; library -> exp (per row, hoisted)
    x, y = z[:, 0], z[:, 1]
    angle = jnp.arctan2(y, x)                                        # [B]
    k = jnp.arange(1, N_FOURIER + 1, dtype=jnp.float32)
    ka = angle[:, None] * k[None, :]                                 # [B, 3]
    explib = jnp.exp(library.reshape(B, 1).astype(jnp.float32))      # [B, 1]
    side = jnp.concatenate(
        [jnp.cos(ka), jnp.sin(ka), explib, jnp.zeros((B, 1), jnp.float32)],
        axis=1).astype(jnp.bfloat16)                                 # [B, 8] bf16
    z_lat = z[:, 2:].astype(jnp.bfloat16)                            # [B, n_latent] bf16

    # ---- fold eval-mode BatchNorm1d into the first linear; pad hidden dim to x16
    s = params["bn_gamma"] / jnp.sqrt(params["bn_run_var"] + BN_EPS)
    w1f = jnp.zeros((n_latent, nh_pad), jnp.float32)
    w1f = w1f.at[:, :n_hidden].set(params["w1"] * s[None, :]).astype(jnp.bfloat16)
    b1f = jnp.zeros((1, nh_pad), jnp.float32)
    b1f = b1f.at[:, :n_hidden].set((params["b1"] - params["bn_run_mean"]) * s
                                   + params["bn_beta"])

    # ---- pad the gene axis to a lane-dense multiple of 128
    w2p = jnp.zeros((nh_pad, n_pad), jnp.float32)
    w2p = w2p.at[:n_hidden, :n_output].set(params["w2"]).astype(jnp.bfloat16)
    b2p = jnp.full((1, n_pad), _NEG_BIG, jnp.float32)
    b2p = b2p.at[:, :n_output].set(params["b2"].reshape(1, -1))
    fwm = params["fourier_W"] * params["cycle_mask"][None, :]
    if remove_cell_cycle:
        fwm = jnp.zeros_like(fwm)
    fw8 = jnp.zeros((8, n_pad), jnp.float32)
    fw8 = fw8.at[:2 * N_FOURIER, :n_output].set(fwm).astype(jnp.bfloat16)

    # ---- batch tiling / padding
    n_outputs = 1 + int(want_px_rate) + int(want_non_cycle_out)
    out_itemsize = int(np.dtype(out_dtype).itemsize)
    tile_b, vmem_limit = _tile_and_vmem(B, n_latent, nh_pad, n_pad, n_outputs, out_itemsize)
    B_pad = _round_up(B, tile_b)
    if B_pad != B:
        pad = ((0, B_pad - B), (0, 0))
        z_lat = jnp.pad(z_lat, pad)
        side = jnp.pad(side, pad)
    nb = B_pad // tile_b

    kernel = _make_kernel(want_px_rate, want_non_cycle_out, out_dtype)

    def run(single_buffer_weights):
        weight_kwargs = {}
        if single_buffer_weights and hasattr(pl, "Buffered"):
            # constant-index weights never change across grid steps -> one buffer.
            weight_kwargs = dict(pipeline_mode=pl.Buffered(1))

        def batch_spec(cols):
            return pl.BlockSpec((tile_b, cols), lambda i: (i, 0))

        def const_spec(shape):
            return pl.BlockSpec(shape, lambda i: (0, 0), **weight_kwargs)

        out_shapes = tuple(jax.ShapeDtypeStruct((B_pad, n_pad), out_dtype)
                           for _ in range(n_outputs))
        outs = pl.pallas_call(
            kernel,
            out_shape=out_shapes,
            grid=(nb,),
            in_specs=[
                batch_spec(n_latent),               # z_lat (bf16)
                batch_spec(8),                      # packed side input (bf16)
                const_spec((n_latent, nh_pad)),     # w1 (BN folded, bf16)
                const_spec((1, nh_pad)),            # b1 (BN folded, f32)
                const_spec((nh_pad, n_pad)),        # w2 (bf16, gene-padded)
                const_spec((1, n_pad)),             # b2 (padded cols = -1e9)
                const_spec((8, n_pad)),             # fourier_W * mask, zero-padded, bf16
            ],
            out_specs=tuple(batch_spec(n_pad) for _ in range(n_outputs)),
            compiler_params=pltpu.CompilerParams(
                dimension_semantics=("parallel",),
                vmem_limit_bytes=vmem_limit,
            ),
        )(z_lat, side, w1f, b1f, w2p, b2p, fw8)
        return jax.block_until_ready(outs)

    try:
        outs = run(True)
    except Exception:
        # Fallback: some JAX versions may reject single-buffered (Buffered(1)) specs.
        outs = run(False)
    outs = list(outs)

    need_crop = (B_pad != B) or (n_pad != n_output)

    def crop(a):
        return a[:B, :n_output] if need_crop else a

    px_scale = crop(outs[0])
    idx = 1
    px_rate = None
    if want_px_rate:
        px_rate = crop(outs[idx])
        idx += 1
    non_cycle_out = crop(outs[idx]) if want_non_cycle_out else None

    # same 10-tuple as the PyTorch module
    return (
        px_scale, params["disp_raw"], px_rate, None, angle[:, None],
        None, None, params["fourier_W"], None, non_cycle_out,
    )


# ----------------------------------------------------------------------------- reference
def reference_forward(z, library, params, n_fourier=N_FOURIER):
    """Pure-JAX (f32) reference mirroring the PyTorch forward (eval-mode BN)."""
    z = z.astype(jnp.float32)
    z_cycle, z_lat = z[:, 0:2], z[:, 2:]
    h = z_lat @ params["w1"] + params["b1"]
    h = (h - params["bn_run_mean"]) / jnp.sqrt(params["bn_run_var"] + BN_EPS)
    h = h * params["bn_gamma"] + params["bn_beta"]
    h = jnp.maximum(h, 0.0)
    non_cycle_out = h @ params["w2"] + params["b2"]
    x, y = z_cycle[:, 0], z_cycle[:, 1]
    angle = jnp.arctan2(y, x)
    basis = [jnp.cos(k * angle) for k in range(1, n_fourier + 1)] + \
            [jnp.sin(k * angle) for k in range(1, n_fourier + 1)]
    fourier_basis = jnp.stack(basis, axis=-1)
    cycle_effect = (fourier_basis @ params["fourier_W"]) * params["cycle_mask"]
    eta = non_cycle_out + cycle_effect
    px_scale = jax.nn.softmax(eta, axis=-1)
    px_rate = jnp.exp(library.reshape(-1, 1)) * px_scale
    return px_scale, px_rate, non_cycle_out, angle


if __name__ == "__main__":
    # small shapes consistent with the module: n_input includes the 2 cycle coords.
    B, n_input, n_hidden, n_output = 8, 10, 32, 16

    key = jax.random.PRNGKey(0)
    kp, kz, kl = jax.random.split(key, 3)
    params = init_params(kp, n_input, n_output, n_hidden)

    z = jax.random.normal(kz, (B, n_input), jnp.float32)
    library = 0.5 * jax.random.normal(kl, (B, 1), jnp.float32)
    t = jnp.zeros((B, 1), jnp.float32)  # unused, kept for signature fidelity

    outs = decoder_ccvi_forward(z, library, t, params, remove_cell_cycle=False)
    outs = jax.block_until_ready(outs)
    px_scale, disp, px_rate, _, angle, _, _, fourier_W, _, non_cycle_out = outs

    # verify against pure-JAX f32 reference (bf16 matmuls/outputs + approx reciprocal)
    ref_scale, ref_rate, ref_nc, ref_angle = reference_forward(z, library, params)
    ps = np.asarray(px_scale.astype(jnp.float32))
    pr = np.asarray(px_rate.astype(jnp.float32))
    nc = np.asarray(non_cycle_out.astype(jnp.float32))
    assert np.allclose(ps, np.asarray(ref_scale), rtol=2e-2, atol=2e-3)
    assert np.allclose(pr, np.asarray(ref_rate), rtol=2e-2, atol=3e-3)
    assert np.allclose(nc, np.asarray(ref_nc), rtol=2e-2, atol=5e-3)
    assert np.allclose(np.asarray(angle[:, 0]), np.asarray(ref_angle), rtol=1e-5, atol=1e-5)
    assert px_scale.shape == (B, n_output) and px_rate.shape == (B, n_output)
    assert non_cycle_out.shape == (B, n_output)
    assert disp.shape == (n_output,) and angle.shape == (B, 1)
    # softmax rows must still sum to ~1 despite gene-axis padding (bf16 + approx recip)
    assert np.allclose(ps.sum(-1), 1.0, atol=1e-2)

    print("KERNEL_OK")
</pallas_src>

<mosaic_0001>
module attributes {stable_mosaic.version = 11 : i64} {
  func.func @kernel(%arg0: i32, %arg1: memref<16x8xbf16, #tpu.memory_space<vmem>>, %arg2: memref<16x8xbf16, #tpu.memory_space<vmem>>, %arg3: memref<8x32xbf16, #tpu.memory_space<vmem>>, %arg4: memref<1x32xf32, #tpu.memory_space<vmem>>, %arg5: memref<32x128xbf16, #tpu.memory_space<vmem>>, %arg6: memref<1x128xf32, #tpu.memory_space<vmem>>, %arg7: memref<8x128xbf16, #tpu.memory_space<vmem>>, %arg8: memref<16x128xbf16, #tpu.memory_space<vmem>>, %arg9: memref<16x128xbf16, #tpu.memory_space<vmem>>, %arg10: memref<16x128xbf16, #tpu.memory_space<vmem>>) attributes {dimension_semantics = [#tpu.dimension_semantics<parallel>], iteration_bounds = array<i64: 1>, scalar_prefetch = 0 : i64, scratch_operands = 0 : i64, tpu.core_type = #tpu.core_type<tc>, window_params = [{transform_indices = @transform_0, window_bounds = array<i64: 16, 8>}, {transform_indices = @transform_1, window_bounds = array<i64: 16, 8>}, {pipeline_mode = #tpu.pipeline_mode<synchronous>, transform_indices = @transform_2, window_bounds = array<i64: 8, 32>}, {pipeline_mode = #tpu.pipeline_mode<synchronous>, transform_indices = @transform_3, window_bounds = array<i64: 1, 32>}, {pipeline_mode = #tpu.pipeline_mode<synchronous>, transform_indices = @transform_4, window_bounds = array<i64: 32, 128>}, {pipeline_mode = #tpu.pipeline_mode<synchronous>, transform_indices = @transform_5, window_bounds = array<i64: 1, 128>}, {pipeline_mode = #tpu.pipeline_mode<synchronous>, transform_indices = @transform_6, window_bounds = array<i64: 8, 128>}, {transform_indices = @transform_7, window_bounds = array<i64: 16, 128>}, {transform_indices = @transform_8, window_bounds = array<i64: 16, 128>}, {transform_indices = @transform_9, window_bounds = array<i64: 16, 128>}]} {
    %c0 = arith.constant 0 : index
    %c0_0 = arith.constant 0 : index
    %0 = vector.load %arg1[%c0, %c0_0] : memref<16x8xbf16, #tpu.memory_space<vmem>>, vector<16x8xbf16>
    %c0_1 = arith.constant 0 : index
    %c0_2 = arith.constant 0 : index
    %1 = vector.load %arg3[%c0_1, %c0_2] : memref<8x32xbf16, #tpu.memory_space<vmem>>, vector<8x32xbf16>
    %cst = arith.constant dense<0.000000e+00> : vector<16x32xf32>
    %2 = tpu.matmul %0, %1, %cst {dimension_numbers = #tpu.dot_dimension_numbers<[1], [0], [0], [1], [0, 0, 1, 1], [], []>} : vector<16x8xbf16>, vector<8x32xbf16>, vector<16x32xf32> -> vector<16x32xf32>
    %c0_3 = arith.constant 0 : index
    %c0_4 = arith.constant 0 : index
    %3 = vector.load %arg4[%c0_3, %c0_4] : memref<1x32xf32, #tpu.memory_space<vmem>>, vector<1x32xf32>
    %4 = vector.broadcast %3 : vector<1x32xf32> to vector<16x32xf32>
    %5 = arith.addf %2, %4 : vector<16x32xf32>
    %cst_5 = arith.constant 0.000000e+00 : f32
    %6 = vector.broadcast %cst_5 : f32 to vector<16x32xf32>
    %7 = arith.maximumf %5, %6 : vector<16x32xf32>
    %8 = arith.truncf %7 : vector<16x32xf32> to vector<16x32xbf16>
    %c0_6 = arith.constant 0 : index
    %c0_7 = arith.constant 0 : index
    %9 = vector.load %arg5[%c0_6, %c0_7] : memref<32x128xbf16, #tpu.memory_space<vmem>>, vector<32x128xbf16>
    %cst_8 = arith.constant dense<0.000000e+00> : vector<16x128xf32>
    %10 = tpu.matmul %8, %9, %cst_8 {dimension_numbers = #tpu.dot_dimension_numbers<[1], [0], [0], [1], [0, 0, 1, 1], [], []>} : vector<16x32xbf16>, vector<32x128xbf16>, vector<16x128xf32> -> vector<16x128xf32>
    %c0_9 = arith.constant 0 : index
    %c0_10 = arith.constant 0 : index
    %11 = vector.load %arg6[%c0_9, %c0_10] : memref<1x128xf32, #tpu.memory_space<vmem>>, vector<1x128xf32>
    %12 = vector.broadcast %11 : vector<1x128xf32> to vector<16x128xf32>
    %13 = arith.addf %10, %12 : vector<16x128xf32>
    %c0_11 = arith.constant 0 : index
    %c0_12 = arith.constant 0 : index
    %14 = vector.load %arg2[%c0_11, %c0_12] : memref<16x8xbf16, #tpu.memory_space<vmem>>, vector<16x8xbf16>
    %c0_13 = arith.constant 0 : index
    %c0_14 = arith.constant 0 : index
    %15 = vector.load %arg7[%c0_13, %c0_14] : memref<8x128xbf16, #tpu.memory_space<vmem>>, vector<8x128xbf16>
    %cst_15 = arith.constant dense<0.000000e+00> : vector<16x128xf32>
    %16 = tpu.matmul %14, %15, %cst_15 {dimension_numbers = #tpu.dot_dimension_numbers<[1], [0], [0], [1], [0, 0, 1, 1], [], []>} : vector<16x8xbf16>, vector<8x128xbf16>, vector<16x128xf32> -> vector<16x128xf32>
    %17 = arith.addf %13, %16 : vector<16x128xf32>
    %cst_16 = arith.constant dense<0xFF800000> : vector<16xf32>
    %18 = vector.multi_reduction <maximumf>, %17, %cst_16 [1] : vector<16x128xf32> to vector<16xf32>
    %19 = vector.shape_cast %18 : vector<16xf32> to vector<16x1xf32>
    %20 = vector.broadcast %19 : vector<16x1xf32> to vector<16x128xf32>
    %21 = arith.subf %17, %20 : vector<16x128xf32>
    %22 = math.exp %21 : vector<16x128xf32>
    %cst_17 = arith.constant dense<0.000000e+00> : vector<16xf32>
    %23 = vector.multi_reduction <add>, %22, %cst_17 [1] : vector<16x128xf32> to vector<16xf32>
    %24 = vector.shape_cast %23 : vector<16xf32> to vector<16x1xf32>
    %25 = tpu.reciprocal %24 {approx = true} : vector<16x1xf32> -> vector<16x1xf32>
    %26 = vector.broadcast %25 : vector<16x1xf32> to vector<16x128xf32>
    %27 = arith.mulf %22, %26 : vector<16x128xf32>
    %28 = arith.truncf %27 : vector<16x128xf32> to vector<16x128xbf16>
    %c0_18 = arith.constant 0 : index
    %c0_19 = arith.constant 0 : index
    %29 = vector.load %arg8[%c0_18, %c0_19] : memref<16x128xbf16, #tpu.memory_space<vmem>>, vector<16x128xbf16>
    tpu.vector_store %arg8[%c0_18, %c0_19], %28 {strides = array<i32>} : memref<16x128xbf16, #tpu.memory_space<vmem>>, vector<16x128xbf16>,
    %c0_20 = arith.constant 0 : index
    %c6 = arith.constant 6 : index
    %30 = vector.load %arg2[%c0_20, %c6] : memref<16x8xbf16, #tpu.memory_space<vmem>>, vector<16x1xbf16>
    %31 = arith.extf %30 : vector<16x1xbf16> to vector<16x1xf32>
    %32 = vector.broadcast %31 : vector<16x1xf32> to vector<16x128xf32>
    %33 = arith.mulf %32, %27 : vector<16x128xf32>
    %34 = arith.truncf %33 : vector<16x128xf32> to vector<16x128xbf16>
    %c0_21 = arith.constant 0 : index
    %c0_22 = arith.constant 0 : index
    %35 = vector.load %arg9[%c0_21, %c0_22] : memref<16x128xbf16, #tpu.memory_space<vmem>>, vector<16x128xbf16>
    tpu.vector_store %arg9[%c0_21, %c0_22], %34 {strides = array<i32>} : memref<16x128xbf16, #tpu.memory_space<vmem>>, vector<16x128xbf16>,
    %36 = arith.truncf %13 : vector<16x128xf32> to vector<16x128xbf16>
    %c0_23 = arith.constant 0 : index
    %c0_24 = arith.constant 0 : index
    %37 = vector.load %arg10[%c0_23, %c0_24] : memref<16x128xbf16, #tpu.memory_space<vmem>>, vector<16x128xbf16>
    tpu.vector_store %arg10[%c0_23, %c0_24], %36 {strides = array<i32>} : memref<16x128xbf16, #tpu.memory_space<vmem>>, vector<16x128xbf16>,
    return
  }
  func.func @transform_0(%arg0: i32) -> (i32, i32) {
    %c0_i32 = arith.constant 0 : i32
    %c0_i32_0 = arith.constant 0 : i32
    return %arg0, %c0_i32 : i32, i32
  }
  func.func @transform_1(%arg0: i32) -> (i32, i32) {
    %c0_i32 = arith.constant 0 : i32
    %c0_i32_0 = arith.constant 0 : i32
    return %arg0, %c0_i32 : i32, i32
  }
  func.func @transform_2(%arg0: i32) -> (i32, i32) {
    %c0_i32 = arith.constant 0 : i32
    %c0_i32_0 = arith.constant 0 : i32
    %c0_i32_1 = arith.constant 0 : i32
    return %c0_i32, %c0_i32_0 : i32, i32
  }
  func.func @transform_3(%arg0: i32) -> (i32, i32) {
    %c0_i32 = arith.constant 0 : i32
    %c0_i32_0 = arith.constant 0 : i32
    %c0_i32_1 = arith.constant 0 : i32
    return %c0_i32, %c0_i32_0 : i32, i32
  }
  func.func @transform_4(%arg0: i32) -> (i32, i32) {
    %c0_i32 = arith.constant 0 : i32
    %c0_i32_0 = arith.constant 0 : i32
    %c0_i32_1 = arith.constant 0 : i32
    return %c0_i32, %c0_i32_0 : i32, i32
  }
  func.func @transform_5(%arg0: i32) -> (i32, i32) {
    %c0_i32 = arith.constant 0 : i32
    %c0_i32_0 = arith.constant 0 : i32
    %c0_i32_1 = arith.constant 0 : i32
    return %c0_i32, %c0_i32_0 : i32, i32
  }
  func.func @transform_6(%arg0: i32) -> (i32, i32) {
    %c0_i32 = arith.constant 0 : i32
    %c0_i32_0 = arith.constant 0 : i32
    %c0_i32_1 = arith.constant 0 : i32
    return %c0_i32, %c0_i32_0 : i32, i32
  }
  func.func @transform_7(%arg0: i32) -> (i32, i32) {
    %c0_i32 = arith.constant 0 : i32
    %c0_i32_0 = arith.constant 0 : i32
    return %arg0, %c0_i32 : i32, i32
  }
  func.func @transform_8(%arg0: i32) -> (i32, i32) {
    %c0_i32 = arith.constant 0 : i32
    %c0_i32_0 = arith.constant 0 : i32
    return %arg0, %c0_i32 : i32, i32
  }
  func.func @transform_9(%arg0: i32) -> (i32, i32) {
    %c0_i32 = arith.constant 0 : i32
    %c0_i32_0 = arith.constant 0 : i32
    return %arg0, %c0_i32 : i32, i32
  }
}

module attributes {stable_mosaic.version = 11 : i64} {
  func.func @kernel(%arg0: i32, %arg1: memref<16x8xbf16, #tpu.memory_space<vmem>>, %arg2: memref<16x8xbf16, #tpu.memory_space<vmem>>, %arg3: memref<8x32xbf16, #tpu.memory_space<vmem>>, %arg4: memref<1x32xf32, #tpu.memory_space<vmem>>, %arg5: memref<32x128xbf16, #tpu.memory_space<vmem>>, %arg6: memref<1x128xf32, #tpu.memory_space<vmem>>, %arg7: memref<8x128xbf16, #tpu.memory_space<vmem>>, %arg8: memref<16x128xbf16, #tpu.memory_space<vmem>>, %arg9: memref<16x128xbf16, #tpu.memory_space<vmem>>, %arg10: memref<16x128xbf16, #tpu.memory_space<vmem>>) attributes {dimension_semantics = [#tpu.dimension_semantics<parallel>], iteration_bounds = array<i64: 1>, scalar_prefetch = 0 : i64, scratch_operands = 0 : i64, tpu.core_type = #tpu.core_type<tc>, window_params = [{transform_indices = @transform_0, window_bounds = array<i64: 16, 8>}, {transform_indices = @transform_1, window_bounds = array<i64: 16, 8>}, {pipeline_mode = #tpu.pipeline_mode<synchronous>, transform_indices = @transform_2, window_bounds = array<i64: 8, 32>}, {pipeline_mode = #tpu.pipeline_mode<synchronous>, transform_indices = @transform_3, window_bounds = array<i64: 1, 32>}, {pipeline_mode = #tpu.pipeline_mode<synchronous>, transform_indices = @transform_4, window_bounds = array<i64: 32, 128>}, {pipeline_mode = #tpu.pipeline_mode<synchronous>, transform_indices = @transform_5, window_bounds = array<i64: 1, 128>}, {pipeline_mode = #tpu.pipeline_mode<synchronous>, transform_indices = @transform_6, window_bounds = array<i64: 8, 128>}, {transform_indices = @transform_7, window_bounds = array<i64: 16, 128>}, {transform_indices = @transform_8, window_bounds = array<i64: 16, 128>}, {transform_indices = @transform_9, window_bounds = array<i64: 16, 128>}]} {
    %c0 = arith.constant 0 : index
    %c0_0 = arith.constant 0 : index
    %0 = vector.load %arg1[%c0, %c0_0] : memref<16x8xbf16, #tpu.memory_space<vmem>>, vector<16x8xbf16>
    %c0_1 = arith.constant 0 : index
    %c0_2 = arith.constant 0 : index
    %1 = vector.load %arg3[%c0_1, %c0_2] : memref<8x32xbf16, #tpu.memory_space<vmem>>, vector<8x32xbf16>
    %cst = arith.constant dense<0.000000e+00> : vector<16x32xf32>
    %2 = tpu.matmul %0, %1, %cst {dimension_numbers = #tpu.dot_dimension_numbers<[1], [0], [0], [1], [0, 0, 1, 1], [], []>} : vector<16x8xbf16>, vector<8x32xbf16>, vector<16x32xf32> -> vector<16x32xf32>
    %c0_3 = arith.constant 0 : index
    %c0_4 = arith.constant 0 : index
    %3 = vector.load %arg4[%c0_3, %c0_4] : memref<1x32xf32, #tpu.memory_space<vmem>>, vector<1x32xf32>
    %4 = vector.broadcast %3 : vector<1x32xf32> to vector<16x32xf32>
    %5 = arith.addf %2, %4 : vector<16x32xf32>
    %cst_5 = arith.constant 0.000000e+00 : f32
    %6 = vector.broadcast %cst_5 : f32 to vector<16x32xf32>
    %7 = arith.maximumf %5, %6 : vector<16x32xf32>
    %8 = arith.truncf %7 : vector<16x32xf32> to vector<16x32xbf16>
    %c0_6 = arith.constant 0 : index
    %c0_7 = arith.constant 0 : index
    %9 = vector.load %arg5[%c0_6, %c0_7] : memref<32x128xbf16, #tpu.memory_space<vmem>>, vector<32x128xbf16>
    %cst_8 = arith.constant dense<0.000000e+00> : vector<16x128xf32>
    %10 = tpu.matmul %8, %9, %cst_8 {dimension_numbers = #tpu.dot_dimension_numbers<[1], [0], [0], [1], [0, 0, 1, 1], [], []>} : vector<16x32xbf16>, vector<32x128xbf16>, vector<16x128xf32> -> vector<16x128xf32>
    %c0_9 = arith.constant 0 : index
    %c0_10 = arith.constant 0 : index
    %11 = vector.load %arg6[%c0_9, %c0_10] : memref<1x128xf32, #tpu.memory_space<vmem>>, vector<1x128xf32>
    %12 = vector.broadcast %11 : vector<1x128xf32> to vector<16x128xf32>
    %13 = arith.addf %10, %12 : vector<16x128xf32>
    %c0_11 = arith.constant 0 : index
    %c0_12 = arith.constant 0 : index
    %14 = vector.load %arg2[%c0_11, %c0_12] : memref<16x8xbf16, #tpu.memory_space<vmem>>, vector<16x8xbf16>
    %c0_13 = arith.constant 0 : index
    %c0_14 = arith.constant 0 : index
    %15 = vector.load %arg7[%c0_13, %c0_14] : memref<8x128xbf16, #tpu.memory_space<vmem>>, vector<8x128xbf16>
    %cst_15 = arith.constant dense<0.000000e+00> : vector<16x128xf32>
    %16 = tpu.matmul %14, %15, %cst_15 {dimension_numbers = #tpu.dot_dimension_numbers<[1], [0], [0], [1], [0, 0, 1, 1], [], []>} : vector<16x8xbf16>, vector<8x128xbf16>, vector<16x128xf32> -> vector<16x128xf32>
    %17 = arith.addf %13, %16 : vector<16x128xf32>
    %cst_16 = arith.constant dense<0xFF800000> : vector<16xf32>
    %18 = vector.multi_reduction <maximumf>, %17, %cst_16 [1] : vector<16x128xf32> to vector<16xf32>
    %19 = vector.shape_cast %18 : vector<16xf32> to vector<16x1xf32>
    %20 = vector.broadcast %19 : vector<16x1xf32> to vector<16x128xf32>
    %21 = arith.subf %17, %20 : vector<16x128xf32>
    %22 = math.exp %21 : vector<16x128xf32>
    %cst_17 = arith.constant dense<0.000000e+00> : vector<16xf32>
    %23 = vector.multi_reduction <add>, %22, %cst_17 [1] : vector<16x128xf32> to vector<16xf32>
    %24 = vector.shape_cast %23 : vector<16xf32> to vector<16x1xf32>
    %25 = tpu.reciprocal %24 {approx = true} : vector<16x1xf32> -> vector<16x1xf32>
    %26 = vector.broadcast %25 : vector<16x1xf32> to vector<16x128xf32>
    %27 = arith.mulf %22, %26 : vector<16x128xf32>
    %28 = arith.truncf %27 : vector<16x128xf32> to vector<16x128xbf16>
    %c0_18 = arith.constant 0 : index
    %c0_19 = arith.constant 0 : index
    %29 = vector.load %arg8[%c0_18, %c0_19] : memref<16x128xbf16, #tpu.memory_space<vmem>>, vector<16x128xbf16>
    tpu.vector_store %arg8[%c0_18, %c0_19], %28 {strides = array<i32>} : memref<16x128xbf16, #tpu.memory_space<vmem>>, vector<16x128xbf16>,
    %c0_20 = arith.constant 0 : index
    %c6 = arith.constant 6 : index
    %30 = vector.load %arg2[%c0_20, %c6] : memref<16x8xbf16, #tpu.memory_space<vmem>>, vector<16x1xbf16>
    %31 = arith.extf %30 : vector<16x1xbf16> to vector<16x1xf32>
    %32 = vector.broadcast %31 : vector<16x1xf32> to vector<16x128xf32>
    %33 = arith.mulf %32, %27 : vector<16x128xf32>
    %34 = arith.truncf %33 : vector<16x128xf32> to vector<16x128xbf16>
    %c0_21 = arith.constant 0 : index
    %c0_22 = arith.constant 0 : index
    %35 = vector.load %arg9[%c0_21, %c0_22] : memref<16x128xbf16, #tpu.memory_space<vmem>>, vector<16x128xbf16>
    tpu.vector_store %arg9[%c0_21, %c0_22], %34 {strides = array<i32>} : memref<16x128xbf16, #tpu.memory_space<vmem>>, vector<16x128xbf16>,
    %36 = arith.truncf %13 : vector<16x128xf32> to vector<16x128xbf16>
    %c0_23 = arith.constant 0 : index
    %c0_24 = arith.constant 0 : index
    %37 = vector.load %arg10[%c0_23, %c0_24] : memref<16x128xbf16, #tpu.memory_space<vmem>>, vector<16x128xbf16>
    tpu.vector_store %arg10[%c0_23, %c0_24], %36 {strides = array<i32>} : memref<16x128xbf16, #tpu.memory_space<vmem>>, vector<16x128xbf16>,
    return
  }
  func.func @transform_0(%arg0: i32) -> (i32, i32) {
    %c0_i32 = arith.constant 0 : i32
    %c0_i32_0 = arith.constant 0 : i32
    return %arg0, %c0_i32 : i32, i32
  }
  func.func @transform_1(%arg0: i32) -> (i32, i32) {
    %c0_i32 = arith.constant 0 : i32
    %c0_i32_0 = arith.constant 0 : i32
    return %arg0, %c0_i32 : i32, i32
  }
  func.func @transform_2(%arg0: i32) -> (i32, i32) {
    %c0_i32 = arith.constant 0 : i32
    %c0_i32_0 = arith.constant 0 : i32
    %c0_i32_1 = arith.constant 0 : i32
    return %c0_i32, %c0_i32_0 : i32, i32
  }
  func.func @transform_3(%arg0: i32) -> (i32, i32) {
    %c0_i32 = arith.constant 0 : i32
    %c0_i32_0 = arith.constant 0 : i32
    %c0_i32_1 = arith.constant 0 : i32
    return %c0_i32, %c0_i32_0 : i32, i32
  }
  func.func @transform_4(%arg0: i32) -> (i32, i32) {
    %c0_i32 = arith.constant 0 : i32
    %c0_i32_0 = arith.constant 0 : i32
    %c0_i32_1 = arith.constant 0 : i32
    return %c0_i32, %c0_i32_0 : i32, i32
  }
  func.func @transform_5(%arg0: i32) -> (i32, i32) {
    %c0_i32 = arith.constant 0 : i32
    %c0_i32_0 = arith.constant 0 : i32
    %c0_i32_1 = arith.constant 0 : i32
    return %c0_i32, %c0_i32_0 : i32, i32
  }
  func.func @transform_6(%arg0: i32) -> (i32, i32) {
    %c0_i32 = arith.constant 0 : i32
    %c0_i32_0 = arith.constant 0 : i32
    %c0_i32_1 = arith.constant 0 : i32
    return %c0_i32, %c0_i32_0 : i32, i32
  }
  func.func @transform_7(%arg0: i32) -> (i32, i32) {
    %c0_i32 = arith.constant 0 : i32
    %c0_i32_0 = arith.constant 0 : i32
    return %arg0, %c0_i32 : i32, i32
  }
  func.func @transform_8(%arg0: i32) -> (i32, i32) {
    %c0_i32 = arith.constant 0 : i32
    %c0_i32_0 = arith.constant 0 : i32
    return %arg0, %c0_i32 : i32, i32
  }
  func.func @transform_9(%arg0: i32) -> (i32, i32) {
    %c0_i32 = arith.constant 0 : i32
    %c0_i32_0 = arith.constant 0 : i32
    return %arg0, %c0_i32 : i32, i32
  }
}

</mosaic_0001>

<bundles_post_ra>
// kernel: tpu_custom_call.1
= control target key start
LH: loop header
LB: loop body
LE: loop exit
PB: predicated region body
PF: predicated region fallthrough
CT: control target
= control target key end

     0   :  { %15 = vsyncpa [#allocation3], 0  ;;  %vm51_vm0 = vcmask 1043456   ;;  %v498_v2 = vmov 0.0   ;;  %vm499_vm1 = vmmov 0   ;;  %vm47_vm2 = vcmask 64512   ;;  %s642_s0 = inlined_call_operand.vmem [shape: bf16[16,8], index: 0, kind: input, shape index: {}]   ;;  %s643_s1 = inlined_call_operand.vmem [shape: bf16[16,8], index: 1, kind: input, shape index: {}]   ;;  %s644_s2 = inlined_call_operand.vmem [shape: bf16[8,32], index: 2, kind: input, shape index: {}]   ;;  %s645_s3 = inlined_call_operand.vmem [shape: f32[1,32], index: 3, kind: input, shape index: {}]   ;;  %s646_s4 = inlined_call_operand.vmem [shape: bf16[32,128], index: 4, kind: input, shape index: {}]   ;;  %s647_s5 = inlined_call_operand.vmem [shape: f32[1,128], index: 5, kind: input, shape index: {}]   ;;  %s648_s6 = inlined_call_operand.vmem [shape: bf16[8,128], index: 6, kind: input, shape index: {}]   ;;  %s649_s7 = inlined_call_operand.hbm [shape: bf16[16,128], index: 7, kind: output, shape index: {0}]   ;;  %s650_s8 = inlined_call_operand.hbm [shape: bf16[16,128], index: 8, kind: output, shape index: {1}]   ;;  %s651_s9 = inlined_call_operand.hbm [shape: bf16[16,128], index: 9, kind: output, shape index: {2}]  }
   0x1   :  { %v34_v0 = vld [vmem:[%s644_s2] sm:$0xf]  ;;  %382 = vmatprep.subr.bf16.mxu0 %v498_v2  ;;  %388 = vmatprep.subr.bf16.mxu1 %v498_v2 }
   0x2   :  { %v169_v1 = vld [vmem:[%s648_s6] sm:$0xf]  ;;  %v53_v3 = vsel %vm51_vm0, %v34_v0, 0  ;;  %384 = vmatprep.mubr.msk.bf16.mxu0 %vm499_vm1, %v498_v2  ;;  %392 = vmatprep.mubr.msk.bf16.mxu1 %vm499_vm1, %v498_v2 }
   0x3   :  { %v416_v4 = vld [vmem:[%s642_s0] sm:$0xff]   ;;  %383 = vmatpush3.bf16.msra.mxu0 %v53_v3  ;;  %v179_v5 = vsel %vm51_vm0, %v169_v1, 0 }
   0x4   :  { %396 = vmatprep.subr.bf16.mxu0 %v498_v2 }
   0x6   :  { %385 = vmatmul.mubr.msk.bf16.vlgmr.msra.gmra.mrb[0].mxu0 %vm47_vm2, %v416_v4 }
   0x7   :  { %16 = vsyncpa [#allocation5], 0  ;;  %397 = vmatpush3.bf16.msra.mxu0 %v179_v5  ;;  %398 = vmatprep.mubr.msk.bf16.mxu0 %vm499_vm1, %v498_v2  ;;  %v417_v6 = vld [vmem:[%s646_s4] sm:$0xff]   ;;  %v418_v7 = vld [vmem:[%s646_s4 + $0x8] sm:$0xff]   ;;  %vm122_vm3 = vcmask 261120   ;;  %v500_v34 = vmov 6  }
   0x8   :  { %389 = vmatpush3.bf16.msra.mxu1 %v417_v6  ;;  %v419_v8 = vld [vmem:[%s643_s1] sm:$0xff]   ;;  %410 = vset.pattern.permute.xlu0 %v500_v34  ;;  %s502_s22 = smov [#allocation4]   ;;  %s503_s24 = smov [#allocation6]  }
   0x9   :  { %390 = vmatprep.subr.bf16.mxu1 %v498_v2  ;;  %v335_v9 = vld [vmem:[%s645_s3] ss:$0 sm:$0xff]  ;;  %s305_s23 = sshll.u32 %s502_s22, 4  ;;  %s317_s25 = sshll.u32 %s503_s24, 4  ;;  %s583_s23 = int_to_ptr.vmem [resolvable:$true] %s305_s23  ;;  %s585_s25 = int_to_ptr.vmem [resolvable:$true] %s317_s25 }
   0xa   :  { %v338_v23 = vld [vmem:[%s647_s5] ss:$0 sm:$0xff] }
   0xb   :  { %v362_v33 = vld [vmem:[%s643_s1] sm:$0xff]   ;;  %s501_s1 = smov [#allocation2]  }
   0xc   :  { %391 = vmatpush3.bf16.msra.mxu1 %v418_v7  ;;  %v363_v35 = vunpack.c.l.bf16 %v362_v33  ;;  %v364_v36 = vunpack.c.h.bf16 %v362_v33  ;;  %s293_s5 = sshll.u32 %s501_s1, 4  ;;  %s294_s5 = int_to_ptr.vmem [resolvable:$true] %s293_s5 }
   0xd   :  { %s428_s26 = scalar_lea.vmem %s294_s5, 128  ;;  %p433_p1 = scmp.lt.s32.totalorder %s294_s5, %s294_s5 }
   0xe   :  { %399 = vmatmul.mubr.msk.bf16.vlgmr.msra.gmra.mrb[4].mxu0 %vm47_vm2, %v419_v8  ;;  %v411_v37 = vpack.i.bf16 %v364_v36, %v363_v35  ;;  %p429_p0 = scmp.ne.s32.totalorder %s294_s5, %s428_s26  ;;  %p434_p2 = scmp.lt.s32.totalorder %s428_s26, %s428_s26 }
  0x10   :  { %p435_p3 = por %p434_p2, %p433_p1 }
  0x12   :  { %p436_p4 = pnand %p435_p3, %p429_p0 }
  0xd9   :  { %v89_v10 = vpop.f32.mrb[0].mxu0 }
  0xda   :  { %v90_v11 = vadd.f32 %v335_v9, %v89_v10  ;;  %v386_v12 = vpop.f32.mrb[1].mxu0 }
  0xdb   :  { %v92_v13 = vpop.f32.mrb[2].mxu0 }
  0xdc   :  { %v93_v14 = vadd.f32 %v335_v9, %v92_v13  ;;  %v387_v15 = vpop.f32.mrb[3].mxu0  ;;  %v96_v16 = vmax.f32 %v90_v11, 0.0 }
  0xde   :  { %v97_v17 = vmax.f32 %v93_v14, 0.0 }
  0xe0   :  { %v98_v18 = vpack.c.bf16 %v97_v17, %v96_v16 }
  0xe1   :  { %v215_v19 = vpop.f32.mrb[4].mxu0 }
  0xe2   :  { %393 = vmatmul.mubr.msk.bf16.vlgmr.msra.gmra.mrb[0].mxu1 %vm122_vm3, %v98_v18  ;;  %v400_v20 = vpop.f32.mrb[5].mxu0 }
  0xe3   :  { %v218_v21 = vpop.f32.mrb[6].mxu0 }
  0xe4   :  { %v401_v22 = vpop.f32.mrb[7].mxu0 }
 0x1b5   :  { %v160_v24 = vpop.f32.mrb[0].mxu1 }
 0x1b6   :  { %v161_v25 = vadd.f32 %v338_v23, %v160_v24  ;;  %v394_v26 = vpop.f32.mrb[1].mxu1 }
 0x1b7   :  { %v163_v27 = vpop.f32.mrb[2].mxu1 }
 0x1b8   :  { %v164_v28 = vadd.f32 %v338_v23, %v163_v27  ;;  %v395_v29 = vpop.f32.mrb[3].mxu1  ;;  %v222_v30 = vadd.f32 %v215_v19, %v161_v25 }
 0x1ba   :  { %v373_v31 = vpack.c.bf16 %v164_v28, %v161_v25  ;;  %224 = vmax.xlane.f32.xlu0 %v222_v30  ;;  %v223_v32 = vadd.f32 %v218_v21, %v164_v28 }
 0x1bc   :  { %374 = vst [vmem:[#allocation6] sm:$0xff] %v373_v31  }
 0x1be   :  { %226 = vmax.xlane.f32.xlu0 %v223_v32 }
 0x1d4   :  { %412 = vperm.xlu0 %410, %v411_v37  }
 0x247   :  { %v225_v38 = vpop.xlane.xlu0 %224 }
 0x248   :  { %v228_v39 = vsub.f32 %v222_v30, %v225_v38 }
 0x24a   :  { %v230_v40 = vmul.f32 1.442695, %v228_v39 }
 0x24b   :  { %v227_v41 = vpop.xlane.xlu0 %226 }
 0x24c   :  { %420 = vpow2.f32 %v230_v40  ;;  %v229_v42 = vsub.f32 %v223_v32, %v227_v41 }
 0x24e   :  { %v232_v43 = vmul.f32 1.442695, %v229_v42 }
 0x250   :  { %422 = vpow2.f32 %v232_v43 }
 0x253   :  { %v413_v49 = vpop.permute.xlu0 %412 }
 0x254   :  { %v415_v51 = vunpack.i.h.bf16 %v413_v49  ;;  %v414_v52 = vunpack.i.l.bf16 %v413_v49 }
 0x256   :  { %v421_v44 = vpop.eup %420 }
 0x257   :  { %234 = vadd.xlane.f32.xlu1 %v421_v44 }
 0x25a   :  { %v423_v45 = vpop.eup %422 }
 0x25b   :  { %236 = vadd.xlane.f32.xlu1 %v423_v45 }
 0x2e4   :  { %v235_v46 = vpop.xlane.xlu1 %234 }
 0x2e5   :  { %424 = vrcp.f32 %v235_v46 }
 0x2e8   :  { %v237_v47 = vpop.xlane.xlu1 %236 }
 0x2e9   :  { %426 = vrcp.f32 %v237_v47 }
 0x2ef   :  { %v425_v48 = vpop.eup %424 }
 0x2f0   :  { %v240_v50 = vmul.f32 %v425_v48, %v421_v44 }
 0x2f2   :  { %v266_v56 = vmul.f32 %v414_v52, %v240_v50 }
 0x2f3   :  { %v427_v53 = vpop.eup %426 }
 0x2f4   :  { %v241_v54 = vmul.f32 %v427_v53, %v423_v45 }
 0x2f6   :  { %v267_v55 = vmul.f32 %v415_v51, %v241_v54  ;;  %v359_v57 = vpack.c.bf16 %v241_v54, %v240_v50 }
 0x2f8   :  { %v368_v58 = vpack.c.bf16 %v267_v55, %v266_v56  ;;  %360 = vst [vmem:[#allocation2] sm:$0xff] %v359_v57  }
 0x2f9   :  { %439 = shalt.err (!%p436_p4)
}
 0x2fa   :  { %s440_s29 = scalar_lea.hbm %s649_s7, 128 }
 0x2fb   :  { %p441_p5 = scmp.ne.s32.totalorder %s649_s7, %s440_s29  ;;  %p444_p6 = scmp.lt.u32.totalorder %s440_s29, %s649_s7 }
 0x2fd   :  { %p446_p7 = pnand %p444_p6, %p441_p5 }
 0x2ff   :  { %449 = shalt.err (!%p446_p7)
}
 0x300   :  { %s504_s13 = smov 64   ;;  %s505_s14 = smov 4   ;;  %369 = vst [vmem:[#allocation4] sm:$0xff] %v368_v58  }
 0x301   :  { %299 = dma.vmem_to_hbm [thread:$0]  %s294_s5, 128, %s649_s7, [#allocation3], %s504_s13, %s504_s13, %s505_s14  }
 0x302   :  { %s450_s15 = scalar_lea.vmem %s583_s23, 128  ;;  %p455_p9 = scmp.lt.s32.totalorder %s583_s23, %s583_s23 }
 0x303   :  { %p451_p8 = scmp.ne.s32.totalorder %s583_s23, %s450_s15  ;;  %p456_p10 = scmp.lt.s32.totalorder %s450_s15, %s450_s15 }
 0x305   :  { %p457_p11 = por %p456_p10, %p455_p9 }
 0x307   :  { %p458_p12 = pnand %p457_p11, %p451_p8 }
 0x309   :  { %461 = shalt.err (!%p458_p12)
}
 0x30a   :  { %s462_s17 = scalar_lea.hbm %s650_s8, 128 }
 0x30b   :  { %p463_p13 = scmp.ne.s32.totalorder %s650_s8, %s462_s17  ;;  %p466_p0 = scmp.lt.u32.totalorder %s462_s17, %s650_s8 }
 0x30d   :  { %p468_p1 = pnand %p466_p0, %p463_p13 }
 0x30f   :  { %471 = shalt.err (!%p468_p1)
}
 0x310   :  { %311 = dma.vmem_to_hbm [thread:$0]  %s583_s23, 128, %s650_s8, [#allocation5], %s504_s13, %s504_s13, %s505_s14  }
 0x311   :  { %s472_s21 = scalar_lea.vmem %s585_s25, 128  ;;  %p477_p3 = scmp.lt.s32.totalorder %s585_s25, %s585_s25 }
 0x312   :  { %p473_p2 = scmp.ne.s32.totalorder %s585_s25, %s472_s21  ;;  %p478_p4 = scmp.lt.s32.totalorder %s472_s21, %s472_s21 }
 0x314   :  { %p479_p5 = por %p478_p4, %p477_p3 }
 0x316   :  { %p480_p6 = pnand %p479_p5, %p473_p2 }
 0x318   :  { %483 = shalt.err (!%p480_p6)
}
 0x319   :  { %s484_s22 = scalar_lea.hbm %s651_s9, 128 }
 0x31a   :  { %p485_p7 = scmp.ne.s32.totalorder %s651_s9, %s484_s22  ;;  %p488_p8 = scmp.lt.u32.totalorder %s484_s22, %s651_s9 }
 0x31c   :  { %p490_p9 = pnand %p488_p8, %p485_p7 }
 0x31e   :  { %493 = shalt.err (!%p490_p9)
}
 0x31f   :  { %323 = dma.vmem_to_hbm [thread:$0]  %s585_s25, 128, %s651_s9, [#allocation5], %s504_s13, %s504_s13, %s505_s14  }
 0x320   :  { %494 = dma.done.wait [#allocation3], 128  }
 0x321   :  { %495 = vsyncadd [#allocation3], 4294967168 }
 0x322   :  { %496 = dma.done.wait [#allocation5], 256  }
 0x323   :  { %497 = vsyncadd [#allocation5], 4294967040 }
 0x324   :  { %333 = vsyncpa [#allocation3], 1 }
 0x325   :  { %334 = vsyncpa [#allocation5], 1 }

// kernel: tpu_custom_call.1
= control target key start
LH: loop header
LB: loop body
LE: loop exit
PB: predicated region body
PF: predicated region fallthrough
CT: control target
= control target key end

     0   :  { %15 = vsyncpa [#allocation3], 0  ;;  %vm51_vm0 = vcmask 1043456   ;;  %v498_v2 = vmov 0.0   ;;  %vm499_vm1 = vmmov 0   ;;  %vm47_vm2 = vcmask 64512   ;;  %s642_s0 = inlined_call_operand.vmem [shape: bf16[16,8], index: 0, kind: input, shape index: {}]   ;;  %s643_s1 = inlined_call_operand.vmem [shape: bf16[16,8], index: 1, kind: input, shape index: {}]   ;;  %s644_s2 = inlined_call_operand.vmem [shape: bf16[8,32], index: 2, kind: input, shape index: {}]   ;;  %s645_s3 = inlined_call_operand.vmem [shape: f32[1,32], index: 3, kind: input, shape index: {}]   ;;  %s646_s4 = inlined_call_operand.vmem [shape: bf16[32,128], index: 4, kind: input, shape index: {}]   ;;  %s647_s5 = inlined_call_operand.vmem [shape: f32[1,128], index: 5, kind: input, shape index: {}]   ;;  %s648_s6 = inlined_call_operand.vmem [shape: bf16[8,128], index: 6, kind: input, shape index: {}]   ;;  %s649_s7 = inlined_call_operand.hbm [shape: bf16[16,128], index: 7, kind: output, shape index: {0}]   ;;  %s650_s8 = inlined_call_operand.hbm [shape: bf16[16,128], index: 8, kind: output, shape index: {1}]   ;;  %s651_s9 = inlined_call_operand.hbm [shape: bf16[16,128], index: 9, kind: output, shape index: {2}]  }
   0x1   :  { %v34_v0 = vld [vmem:[%s644_s2] sm:$0xf]  ;;  %382 = vmatprep.subr.bf16.mxu0 %v498_v2  ;;  %388 = vmatprep.subr.bf16.mxu1 %v498_v2 }
   0x2   :  { %v169_v1 = vld [vmem:[%s648_s6] sm:$0xf]  ;;  %v53_v3 = vsel %vm51_vm0, %v34_v0, 0  ;;  %384 = vmatprep.mubr.msk.bf16.mxu0 %vm499_vm1, %v498_v2  ;;  %392 = vmatprep.mubr.msk.bf16.mxu1 %vm499_vm1, %v498_v2 }
   0x3   :  { %v416_v4 = vld [vmem:[%s642_s0] sm:$0xff]   ;;  %383 = vmatpush3.bf16.msra.mxu0 %v53_v3  ;;  %v179_v5 = vsel %vm51_vm0, %v169_v1, 0 }
   0x4   :  { %396 = vmatprep.subr.bf16.mxu0 %v498_v2 }
   0x6   :  { %385 = vmatmul.mubr.msk.bf16.vlgmr.msra.gmra.mrb[0].mxu0 %vm47_vm2, %v416_v4 }
   0x7   :  { %16 = vsyncpa [#allocation5], 0  ;;  %397 = vmatpush3.bf16.msra.mxu0 %v179_v5  ;;  %398 = vmatprep.mubr.msk.bf16.mxu0 %vm499_vm1, %v498_v2  ;;  %v417_v6 = vld [vmem:[%s646_s4] sm:$0xff]   ;;  %v418_v7 = vld [vmem:[%s646_s4 + $0x8] sm:$0xff]   ;;  %vm122_vm3 = vcmask 261120   ;;  %v500_v34 = vmov 6  }
   0x8   :  { %389 = vmatpush3.bf16.msra.mxu1 %v417_v6  ;;  %v419_v8 = vld [vmem:[%s643_s1] sm:$0xff]   ;;  %410 = vset.pattern.permute.xlu0 %v500_v34  ;;  %s502_s22 = smov [#allocation4]   ;;  %s503_s24 = smov [#allocation6]  }
   0x9   :  { %390 = vmatprep.subr.bf16.mxu1 %v498_v2  ;;  %v335_v9 = vld [vmem:[%s645_s3] ss:$0 sm:$0xff]  ;;  %s305_s23 = sshll.u32 %s502_s22, 4  ;;  %s317_s25 = sshll.u32 %s503_s24, 4  ;;  %s583_s23 = int_to_ptr.vmem [resolvable:$true] %s305_s23  ;;  %s585_s25 = int_to_ptr.vmem [resolvable:$true] %s317_s25 }
   0xa   :  { %v338_v23 = vld [vmem:[%s647_s5] ss:$0 sm:$0xff] }
   0xb   :  { %v362_v33 = vld [vmem:[%s643_s1] sm:$0xff]   ;;  %s501_s1 = smov [#allocation2]  }
   0xc   :  { %391 = vmatpush3.bf16.msra.mxu1 %v418_v7  ;;  %v363_v35 = vunpack.c.l.bf16 %v362_v33  ;;  %v364_v36 = vunpack.c.h.bf16 %v362_v33  ;;  %s293_s5 = sshll.u32 %s501_s1, 4  ;;  %s294_s5 = int_to_ptr.vmem [resolvable:$true] %s293_s5 }
   0xd   :  { %s428_s26 = scalar_lea.vmem %s294_s5, 128  ;;  %p433_p1 = scmp.lt.s32.totalorder %s294_s5, %s294_s5 }
   0xe   :  { %399 = vmatmul.mubr.msk.bf16.vlgmr.msra.gmra.mrb[4].mxu0 %vm47_vm2, %v419_v8  ;;  %v411_v37 = vpack.i.bf16 %v364_v36, %v363_v35  ;;  %p429_p0 = scmp.ne.s32.totalorder %s294_s5, %s428_s26  ;;  %p434_p2 = scmp.lt.s32.totalorder %s428_s26, %s428_s26 }
  0x10   :  { %p435_p3 = por %p434_p2, %p433_p1 }
  0x12   :  { %p436_p4 = pnand %p435_p3, %p429_p0 }
  0xd9   :  { %v89_v10 = vpop.f32.mrb[0].mxu0 }
  0xda   :  { %v90_v11 = vadd.f32 %v335_v9, %v89_v10  ;;  %v386_v12 = vpop.f32.mrb[1].mxu0 }
  0xdb   :  { %v92_v13 = vpop.f32.mrb[2].mxu0 }
  0xdc   :  { %v93_v14 = vadd.f32 %v335_v9, %v92_v13  ;;  %v387_v15 = vpop.f32.mrb[3].mxu0  ;;  %v96_v16 = vmax.f32 %v90_v11, 0.0 }
  0xde   :  { %v97_v17 = vmax.f32 %v93_v14, 0.0 }
  0xe0   :  { %v98_v18 = vpack.c.bf16 %v97_v17, %v96_v16 }
  0xe1   :  { %v215_v19 = vpop.f32.mrb[4].mxu0 }
  0xe2   :  { %393 = vmatmul.mubr.msk.bf16.vlgmr.msra.gmra.mrb[0].mxu1 %vm122_vm3, %v98_v18  ;;  %v400_v20 = vpop.f32.mrb[5].mxu0 }
  0xe3   :  { %v218_v21 = vpop.f32.mrb[6].mxu0 }
  0xe4   :  { %v401_v22 = vpop.f32.mrb[7].mxu0 }
 0x1b5   :  { %v160_v24 = vpop.f32.mrb[0].mxu1 }
 0x1b6   :  { %v161_v25 = vadd.f32 %v338_v23, %v160_v24  ;;  %v394_v26 = vpop.f32.mrb[1].mxu1 }
 0x1b7   :  { %v163_v27 = vpop.f32.mrb[2].mxu1 }
 0x1b8   :  { %v164_v28 = vadd.f32 %v338_v23, %v163_v27  ;;  %v395_v29 = vpop.f32.mrb[3].mxu1  ;;  %v222_v30 = vadd.f32 %v215_v19, %v161_v25 }
 0x1ba   :  { %v373_v31 = vpack.c.bf16 %v164_v28, %v161_v25  ;;  %224 = vmax.xlane.f32.xlu0 %v222_v30  ;;  %v223_v32 = vadd.f32 %v218_v21, %v164_v28 }
 0x1bc   :  { %374 = vst [vmem:[#allocation6] sm:$0xff] %v373_v31  }
 0x1be   :  { %226 = vmax.xlane.f32.xlu0 %v223_v32 }
 0x1d4   :  { %412 = vperm.xlu0 %410, %v411_v37  }
 0x247   :  { %v225_v38 = vpop.xlane.xlu0 %224 }
 0x248   :  { %v228_v39 = vsub.f32 %v222_v30, %v225_v38 }
 0x24a   :  { %v230_v40 = vmul.f32 1.442695, %v228_v39 }
 0x24b   :  { %v227_v41 = vpop.xlane.xlu0 %226 }
 0x24c   :  { %420 = vpow2.f32 %v230_v40  ;;  %v229_v42 = vsub.f32 %v223_v32, %v227_v41 }
 0x24e   :  { %v232_v43 = vmul.f32 1.442695, %v229_v42 }
 0x250   :  { %422 = vpow2.f32 %v232_v43 }
 0x253   :  { %v413_v49 = vpop.permute.xlu0 %412 }
 0x254   :  { %v415_v51 = vunpack.i.h.bf16 %v413_v49  ;;  %v414_v52 = vunpack.i.l.bf16 %v413_v49 }
 0x256   :  { %v421_v44 = vpop.eup %420 }
 0x257   :  { %234 = vadd.xlane.f32.xlu1 %v421_v44 }
 0x25a   :  { %v423_v45 = vpop.eup %422 }
 0x25b   :  { %236 = vadd.xlane.f32.xlu1 %v423_v45 }
 0x2e4   :  { %v235_v46 = vpop.xlane.xlu1 %234 }
 0x2e5   :  { %424 = vrcp.f32 %v235_v46 }
 0x2e8   :  { %v237_v47 = vpop.xlane.xlu1 %236 }
 0x2e9   :  { %426 = vrcp.f32 %v237_v47 }
 0x2ef   :  { %v425_v48 = vpop.eup %424 }
 0x2f0   :  { %v240_v50 = vmul.f32 %v425_v48, %v421_v44 }
 0x2f2   :  { %v266_v56 = vmul.f32 %v414_v52, %v240_v50 }
 0x2f3   :  { %v427_v53 = vpop.eup %426 }
 0x2f4   :  { %v241_v54 = vmul.f32 %v427_v53, %v423_v45 }
 0x2f6   :  { %v267_v55 = vmul.f32 %v415_v51, %v241_v54  ;;  %v359_v57 = vpack.c.bf16 %v241_v54, %v240_v50 }
 0x2f8   :  { %v368_v58 = vpack.c.bf16 %v267_v55, %v266_v56  ;;  %360 = vst [vmem:[#allocation2] sm:$0xff] %v359_v57  }
 0x2f9   :  { %439 = shalt.err (!%p436_p4)
}
 0x2fa   :  { %s440_s29 = scalar_lea.hbm %s649_s7, 128 }
 0x2fb   :  { %p441_p5 = scmp.ne.s32.totalorder %s649_s7, %s440_s29  ;;  %p444_p6 = scmp.lt.u32.totalorder %s440_s29, %s649_s7 }
 0x2fd   :  { %p446_p7 = pnand %p444_p6, %p441_p5 }
 0x2ff   :  { %449 = shalt.err (!%p446_p7)
}
 0x300   :  { %s504_s13 = smov 64   ;;  %s505_s14 = smov 4   ;;  %369 = vst [vmem:[#allocation4] sm:$0xff] %v368_v58  }
 0x301   :  { %299 = dma.vmem_to_hbm [thread:$0]  %s294_s5, 128, %s649_s7, [#allocation3], %s504_s13, %s504_s13, %s505_s14  }
 0x302   :  { %s450_s15 = scalar_lea.vmem %s583_s23, 128  ;;  %p455_p9 = scmp.lt.s32.totalorder %s583_s23, %s583_s23 }
 0x303   :  { %p451_p8 = scmp.ne.s32.totalorder %s583_s23, %s450_s15  ;;  %p456_p10 = scmp.lt.s32.totalorder %s450_s15, %s450_s15 }
 0x305   :  { %p457_p11 = por %p456_p10, %p455_p9 }
 0x307   :  { %p458_p12 = pnand %p457_p11, %p451_p8 }
 0x309   :  { %461 = shalt.err (!%p458_p12)
}
 0x30a   :  { %s462_s17 = scalar_lea.hbm %s650_s8, 128 }
 0x30b   :  { %p463_p13 = scmp.ne.s32.totalorder %s650_s8, %s462_s17  ;;  %p466_p0 = scmp.lt.u32.totalorder %s462_s17, %s650_s8 }
 0x30d   :  { %p468_p1 = pnand %p466_p0, %p463_p13 }
 0x30f   :  { %471 = shalt.err (!%p468_p1)
}
 0x310   :  { %311 = dma.vmem_to_hbm [thread:$0]  %s583_s23, 128, %s650_s8, [#allocation5], %s504_s13, %s504_s13, %s505_s14  }
 0x311   :  { %s472_s21 = scalar_lea.vmem %s585_s25, 128  ;;  %p477_p3 = scmp.lt.s32.totalorder %s585_s25, %s585_s25 }
 0x312   :  { %p473_p2 = scmp.ne.s32.totalorder %s585_s25, %s472_s21  ;;  %p478_p4 = scmp.lt.s32.totalorder %s472_s21, %s472_s21 }
 0x314   :  { %p479_p5 = por %p478_p4, %p477_p3 }
 0x316   :  { %p480_p6 = pnand %p479_p5, %p473_p2 }
 0x318   :  { %483 = shalt.err (!%p480_p6)
}
 0x319   :  { %s484_s22 = scalar_lea.hbm %s651_s9, 128 }
 0x31a   :  { %p485_p7 = scmp.ne.s32.totalorder %s651_s9, %s484_s22  ;;  %p488_p8 = scmp.lt.u32.totalorder %s484_s22, %s651_s9 }
 0x31c   :  { %p490_p9 = pnand %p488_p8, %p485_p7 }
 0x31e   :  { %493 = shalt.err (!%p490_p9)
}
 0x31f   :  { %323 = dma.vmem_to_hbm [thread:$0]  %s585_s25, 128, %s651_s9, [#allocation5], %s504_s13, %s504_s13, %s505_s14  }
 0x320   :  { %494 = dma.done.wait [#allocation3], 128  }
 0x321   :  { %495 = vsyncadd [#allocation3], 4294967168 }
 0x322   :  { %496 = dma.done.wait [#allocation5], 256  }
 0x323   :  { %497 = vsyncadd [#allocation5], 4294967040 }
 0x324   :  { %333 = vsyncpa [#allocation3], 1 }
 0x325   :  { %334 = vsyncpa [#allocation5], 1 }

</bundles_post_ra>
